<compile_context>
chip_gen: v5e
topology: v5e:2x2
jax: 0.10.0
libtpu: 0.0.40
codegen_flags: <defaults>
</compile_context>

<pallas_src>
import jax
import jax.numpy as jnp
from jax import lax
from jax.experimental import pallas as pl
from jax.experimental.pallas import tpu as pltpu

KSIZE = 3
PAD = (KSIZE - 1) // 2


def _round_up(v, m):
    return (v + m - 1) // m * m


def spatial_attention(x, conv_w, bn_gamma, bn_beta, bn_mean, bn_var,
                      eps=1e-5, c_chunk_cap=None):
    """x: (N, C, H, W); conv_w: (1, 2, KSIZE, KSIZE); returns (N, 1, H, W)."""
    N, C, H, W = x.shape
    HW = H * W
    base = PAD * (W + 1)            # flat zero-padding border length
    Lpad = HW + 2 * base

    # ---- Fold eval-mode BatchNorm (single channel) into scale / shift. ----
    g = bn_gamma.astype(jnp.float32)
    inv_std = 1.0 / jnp.sqrt(bn_var.astype(jnp.float32) + eps)
    scale = (g * inv_std)[0]
    shift = (bn_beta.astype(jnp.float32)
             - bn_mean.astype(jnp.float32) * g * inv_std)[0]

    # Fold BN scale into the conv weights; fold the mean-pool's 1/C into the
    # avg-pool channel so the kernel only accumulates a channel SUM.
    w = conv_w.astype(jnp.float32)[0] * scale                      # (2, K, K)
    w = w * jnp.array([1.0, 1.0 / C], jnp.float32).reshape(2, 1, 1)
    w_flat = w.reshape(-1)                                         # (18,)
    bn_vec = jnp.reshape(shift, (1,)).astype(jnp.float32)          # (1,)

    # ---- Channel-chunk sizing from queried VMEM capacity (lane-dense). ----
    try:
        vmem_cap = int(pltpu.get_tpu_info().vmem_capacity_bytes)
    except Exception:                                   # pragma: no cover
        vmem_cap = 64 * 1024 * 1024                     # conservative (v7x)

    elem_bytes = jnp.dtype(x.dtype).itemsize
    bytes_per_ch = _round_up(HW, 128) * elem_bytes      # lane-dense footprint
    # ~1/8 of physical VMEM per input buffer (double-buffered -> ~1/4 for x),
    # leaving headroom for output / scratch / internal scratch.
    target_block_bytes = max(2 * 1024 * 1024, vmem_cap // 8)
    sublane = {4: 8, 2: 16, 1: 32}.get(elem_bytes, 8)
    c_chunk = max(1, target_block_bytes // bytes_per_ch)
    if c_chunk_cap is not None:
        c_chunk = min(c_chunk, c_chunk_cap)
    if c_chunk >= C:
        c_chunk = C
    else:
        # Keep the second-minor block dim a whole number of sublane tiles.
        c_chunk = max(sublane, (c_chunk // sublane) * sublane)
        c_chunk = min(c_chunk, C)
    num_c = pl.cdiv(C, c_chunk)
    rem = C % c_chunk                                   # static; 0 == exact split
    vmem_limit_bytes = int(min(vmem_cap * 3 // 4, 96 * 1024 * 1024))

    x_flat = x.reshape(N, C, HW)                        # free for contiguous NCHW

    def kernel(w_ref, bn_ref, x_ref, o_ref, max_ref, sum_ref, pmax_ref, psum_ref):
        c_idx = pl.program_id(1)
        last = pl.num_programs(1) - 1

        @pl.when(c_idx == 0)
        def _init():
            max_ref[...] = jnp.full_like(max_ref, -jnp.inf)
            sum_ref[...] = jnp.zeros_like(sum_ref)

        def _accumulate(masked):
            xc = x_ref[...].astype(jnp.float32)         # (c_chunk, HW)
            if masked:
                ch = lax.broadcasted_iota(jnp.int32, xc.shape, 0)
                valid = ch < rem
                xm = jnp.where(valid, xc, -jnp.inf)
                xs = jnp.where(valid, xc, 0.0)
            else:
                xm = xc
                xs = xc
            max_ref[...] = jnp.maximum(max_ref[...],
                                       jnp.max(xm, axis=0, keepdims=True))
            sum_ref[...] = sum_ref[...] + jnp.sum(xs, axis=0, keepdims=True)

        if rem == 0:
            _accumulate(False)                          # no masking overhead
        else:
            @pl.when(c_idx != last)
            def _full():
                _accumulate(False)

            @pl.when(c_idx == last)
            def _tail():
                _accumulate(True)                       # static tail mask

        @pl.when(c_idx == last)
        def _finalize():
            # Flat zero-padded pooled planes: zero only the two borders,
            # overwrite the interior with the accumulators.
            zb = jnp.zeros((1, base), jnp.float32)
            pmax_ref[:, 0:base] = zb
            pmax_ref[:, base + HW:Lpad] = zb
            psum_ref[:, 0:base] = zb
            psum_ref[:, base + HW:Lpad] = zb
            pmax_ref[:, base:base + HW] = max_ref[...]
            psum_ref[:, base:base + HW] = sum_ref[...]

            # Hoisted SMEM scalar reads (BN scale & 1/C already folded in).
            wv = [w_ref[i] for i in range(2 * KSIZE * KSIZE)]
            b0 = bn_ref[0]

            col = lax.broadcasted_iota(jnp.int32, (1, HW), 1) % W

            acc = jnp.zeros((1, HW), jnp.float32)
            for kh in range(KSIZE):
                dh = kh - PAD
                for kw in range(KSIZE):
                    dw = kw - PAD
                    start = base + dh * W + dw          # static slice start
                    sm = pmax_ref[:, start:start + HW]
                    ss = psum_ref[:, start:start + HW]
                    t = kh * KSIZE + kw
                    tap = wv[t] * sm + wv[KSIZE * KSIZE + t] * ss
                    # Row over/underflow lands in the flat zero border; only
                    # column wrap-around needs masking.
                    if dw > 0:
                        tap = jnp.where(col < (W - dw), tap, 0.0)
                    elif dw < 0:
                        tap = jnp.where(col >= (-dw), tap, 0.0)
                    acc = acc + tap

            # Eval-mode BN (scale folded into weights) + sigmoid.
            o_ref[...] = jax.nn.sigmoid(acc + b0).astype(o_ref.dtype)

    out = pl.pallas_call(
        kernel,
        out_shape=jax.ShapeDtypeStruct((N, 1, HW), x.dtype),
        grid=(N, num_c),
        in_specs=[
            pl.BlockSpec(memory_space=pltpu.MemorySpace.SMEM),   # conv weights
            pl.BlockSpec(memory_space=pltpu.MemorySpace.SMEM),   # folded BN shift
            pl.BlockSpec((None, c_chunk, HW), lambda n, c: (n, c, 0)),
        ],
        out_specs=pl.BlockSpec((None, 1, HW), lambda n, c: (n, 0, 0)),
        scratch_shapes=[
            pltpu.VMEM((1, HW), jnp.float32),      # running channel max
            pltpu.VMEM((1, HW), jnp.float32),      # running channel sum
            pltpu.VMEM((1, Lpad), jnp.float32),    # flat zero-padded max plane
            pltpu.VMEM((1, Lpad), jnp.float32),    # flat zero-padded sum plane
        ],
        compiler_params=pltpu.CompilerParams(
            dimension_semantics=("parallel", "arbitrary"),
            vmem_limit_bytes=vmem_limit_bytes,
        ),
    )(w_flat, bn_vec, x_flat)
    return out.reshape(N, 1, H, W)


def _reference(x, conv_w, bn_gamma, bn_beta, bn_mean, bn_var, eps=1e-5):
    """Pure-JAX reference mirroring the PyTorch forward (eval-mode BN)."""
    maxp = jnp.max(x, axis=1, keepdims=True)
    avgp = jnp.mean(x, axis=1, keepdims=True)
    cat = jnp.concatenate([maxp, avgp], axis=1)
    conv = lax.conv_general_dilated(cat, conv_w, window_strides=(1, 1),
                                    padding=((PAD, PAD), (PAD, PAD)),
                                    dimension_numbers=("NCHW", "OIHW", "NCHW"))
    g = bn_gamma.reshape(1, -1, 1, 1)
    b = bn_beta.reshape(1, -1, 1, 1)
    m = bn_mean.reshape(1, -1, 1, 1)
    v = bn_var.reshape(1, -1, 1, 1)
    return jax.nn.sigmoid((conv - m) / jnp.sqrt(v + eps) * g + b)


if __name__ == "__main__":
    key = jax.random.PRNGKey(0)
    k_x, k_w = jax.random.split(key)

    N, C, H, W = 2, 4, 16, 16
    x = jax.random.normal(k_x, (N, C, H, W), dtype=jnp.float32)

    # nn.Conv2d(2, 1, kernel_size=3, padding=1, bias=False) + nn.BatchNorm2d(1)
    conv_w = 0.2 * jax.random.normal(k_w, (1, 2, KSIZE, KSIZE), dtype=jnp.float32)
    bn_gamma = jnp.array([1.2], dtype=jnp.float32)
    bn_beta = jnp.array([-0.05], dtype=jnp.float32)
    bn_mean = jnp.array([0.1], dtype=jnp.float32)
    bn_var = jnp.array([0.9], dtype=jnp.float32)
    # TODO(synk): BatchNorm2d is evaluated in inference mode (running stats);
    # training-mode batch-statistic updates are not reproduced.

    out = spatial_attention(x, conv_w, bn_gamma, bn_beta, bn_mean, bn_var)
    out = jax.block_until_ready(out)
    ref = _reference(x, conv_w, bn_gamma, bn_beta, bn_mean, bn_var)
    assert out.shape == (N, 1, H, W), out.shape
    assert jnp.allclose(out, ref, atol=1e-5, rtol=1e-5), \
        float(jnp.max(jnp.abs(out - ref)))

    # Second check: awkward channel count + forced small chunks to exercise
    # the cdiv chunking with static tail masking.
    C2 = 12
    x2 = jax.random.normal(jax.random.PRNGKey(1), (1, C2, H, W), jnp.float32)
    out2 = spatial_attention(x2, conv_w, bn_gamma, bn_beta, bn_mean, bn_var,
                             c_chunk_cap=8)
    out2 = jax.block_until_ready(out2)
    ref2 = _reference(x2, conv_w, bn_gamma, bn_beta, bn_mean, bn_var)
    assert jnp.allclose(out2, ref2, atol=1e-5, rtol=1e-5), \
        float(jnp.max(jnp.abs(out2 - ref2)))

    print("KERNEL_OK")
</pallas_src>

<mosaic_0001>
module attributes {stable_mosaic.version = 11 : i64} {
  func.func @kernel(%arg0: i32, %arg1: i32, %arg2: memref<18xf32, #tpu.memory_space<smem>>, %arg3: memref<1xf32, #tpu.memory_space<smem>>, %arg4: memref<1x4x256xf32, #tpu.memory_space<vmem>>, %arg5: memref<1x1x256xf32, #tpu.memory_space<vmem>>, %arg6: memref<1x256xf32, #tpu.memory_space<vmem>>, %arg7: memref<1x256xf32, #tpu.memory_space<vmem>>, %arg8: memref<1x290xf32, #tpu.memory_space<vmem>>, %arg9: memref<1x290xf32, #tpu.memory_space<vmem>>) attributes {dimension_semantics = [#tpu.dimension_semantics<parallel>, #tpu.dimension_semantics<arbitrary>], iteration_bounds = array<i64: 2, 1>, scalar_prefetch = 0 : i64, scratch_operands = 4 : i64, tpu.core_type = #tpu.core_type<tc>, window_params = [{transform_indices = @transform_0, window_bounds = array<i64: 18>}, {transform_indices = @transform_1, window_bounds = array<i64: 1>}, {transform_indices = @transform_2, window_bounds = array<i64: 1, 4, 256>}, {transform_indices = @transform_3, window_bounds = array<i64: 1, 1, 256>}]} {
    %c0_i32 = arith.constant 0 : i32
    %0 = arith.cmpi eq, %arg1, %c0_i32 : i32
    %1 = arith.extui %0 : i1 to i32
    %c0_i32_0 = arith.constant 0 : i32
    %2 = arith.cmpi ne, %1, %c0_i32_0 : i32
    scf.if %2 {
      %cst_14 = arith.constant 0xFF800000 : f32
      %18 = vector.broadcast %cst_14 : f32 to vector<1x256xf32>
      %c0_15 = arith.constant 0 : index
      %c0_16 = arith.constant 0 : index
      %19 = vector.load %arg6[%c0_15, %c0_16] : memref<1x256xf32, #tpu.memory_space<vmem>>, vector<1x256xf32>
      tpu.vector_store %arg6[%c0_15, %c0_16], %18 {strides = array<i32>} : memref<1x256xf32, #tpu.memory_space<vmem>>, vector<1x256xf32>,
      %cst_17 = arith.constant 0.000000e+00 : f32
      %20 = vector.broadcast %cst_17 : f32 to vector<1x256xf32>
      %c0_18 = arith.constant 0 : index
      %c0_19 = arith.constant 0 : index
      %21 = vector.load %arg7[%c0_18, %c0_19] : memref<1x256xf32, #tpu.memory_space<vmem>>, vector<1x256xf32>
      tpu.vector_store %arg7[%c0_18, %c0_19], %20 {strides = array<i32>} : memref<1x256xf32, #tpu.memory_space<vmem>>, vector<1x256xf32>,
    } else {
    }
    %c0 = arith.constant 0 : index
    %c0_1 = arith.constant 0 : index
    %c0_2 = arith.constant 0 : index
    %3 = vector.load %arg4[%c0, %c0_1, %c0_2] : memref<1x4x256xf32, #tpu.memory_space<vmem>>, vector<1x4x256xf32>
    %4 = vector.shape_cast %3 : vector<1x4x256xf32> to vector<4x256xf32>
    %c0_3 = arith.constant 0 : index
    %c0_4 = arith.constant 0 : index
    %5 = vector.load %arg6[%c0_3, %c0_4] : memref<1x256xf32, #tpu.memory_space<vmem>>, vector<1x256xf32>
    %cst = arith.constant dense<0xFF800000> : vector<256xf32>
    %6 = vector.multi_reduction <maximumf>, %4, %cst [0] : vector<4x256xf32> to vector<256xf32>
    %7 = vector.shape_cast %6 : vector<256xf32> to vector<1x256xf32>
    %8 = arith.maximumf %5, %7 : vector<1x256xf32>
    %c0_5 = arith.constant 0 : index
    %c0_6 = arith.constant 0 : index
    %9 = vector.load %arg6[%c0_5, %c0_6] : memref<1x256xf32, #tpu.memory_space<vmem>>, vector<1x256xf32>
    tpu.vector_store %arg6[%c0_5, %c0_6], %8 {strides = array<i32>} : memref<1x256xf32, #tpu.memory_space<vmem>>, vector<1x256xf32>,
    %c0_7 = arith.constant 0 : index
    %c0_8 = arith.constant 0 : index
    %10 = vector.load %arg7[%c0_7, %c0_8] : memref<1x256xf32, #tpu.memory_space<vmem>>, vector<1x256xf32>
    %cst_9 = arith.constant dense<0.000000e+00> : vector<256xf32>
    %11 = vector.multi_reduction <add>, %4, %cst_9 [0] : vector<4x256xf32> to vector<256xf32>
    %12 = vector.shape_cast %11 : vector<256xf32> to vector<1x256xf32>
    %13 = arith.addf %10, %12 : vector<1x256xf32>
    %c0_10 = arith.constant 0 : index
    %c0_11 = arith.constant 0 : index
    %14 = vector.load %arg7[%c0_10, %c0_11] : memref<1x256xf32, #tpu.memory_space<vmem>>, vector<1x256xf32>
    tpu.vector_store %arg7[%c0_10, %c0_11], %13 {strides = array<i32>} : memref<1x256xf32, #tpu.memory_space<vmem>>, vector<1x256xf32>,
    %c0_i32_12 = arith.constant 0 : i32
    %15 = arith.cmpi eq, %arg1, %c0_i32_12 : i32
    %16 = arith.extui %15 : i1 to i32
    %c0_i32_13 = arith.constant 0 : i32
    %17 = arith.cmpi ne, %16, %c0_i32_13 : i32
    scf.if %17 {
      %cst_14 = arith.constant 0.000000e+00 : f32
      %18 = vector.broadcast %cst_14 : f32 to vector<1x17xf32>
      %c0_15 = arith.constant 0 : index
      %c0_16 = arith.constant 0 : index
      %19 = vector.load %arg8[%c0_15, %c0_16] : memref<1x290xf32, #tpu.memory_space<vmem>>, vector<1x17xf32>
      tpu.vector_store %arg8[%c0_15, %c0_16], %18 {strides = array<i32>} : memref<1x290xf32, #tpu.memory_space<vmem>>, vector<1x17xf32>,
      %c0_17 = arith.constant 0 : index
      %c273 = arith.constant 273 : index
      %20 = vector.load %arg8[%c0_17, %c273] : memref<1x290xf32, #tpu.memory_space<vmem>>, vector<1x17xf32>
      tpu.vector_store %arg8[%c0_17, %c273], %18 {strides = array<i32>} : memref<1x290xf32, #tpu.memory_space<vmem>>, vector<1x17xf32>,
      %c0_18 = arith.constant 0 : index
      %c0_19 = arith.constant 0 : index
      %21 = vector.load %arg9[%c0_18, %c0_19] : memref<1x290xf32, #tpu.memory_space<vmem>>, vector<1x17xf32>
      tpu.vector_store %arg9[%c0_18, %c0_19], %18 {strides = array<i32>} : memref<1x290xf32, #tpu.memory_space<vmem>>, vector<1x17xf32>,
      %c0_20 = arith.constant 0 : index
      %c273_21 = arith.constant 273 : index
      %22 = vector.load %arg9[%c0_20, %c273_21] : memref<1x290xf32, #tpu.memory_space<vmem>>, vector<1x17xf32>
      tpu.vector_store %arg9[%c0_20, %c273_21], %18 {strides = array<i32>} : memref<1x290xf32, #tpu.memory_space<vmem>>, vector<1x17xf32>,
      %c0_22 = arith.constant 0 : index
      %c0_23 = arith.constant 0 : index
      %23 = vector.load %arg6[%c0_22, %c0_23] : memref<1x256xf32, #tpu.memory_space<vmem>>, vector<1x256xf32>
      %c0_24 = arith.constant 0 : index
      %c17 = arith.constant 17 : index
      %24 = vector.load %arg8[%c0_24, %c17] : memref<1x290xf32, #tpu.memory_space<vmem>>, vector<1x256xf32>
      tpu.vector_store %arg8[%c0_24, %c17], %23 {strides = array<i32>} : memref<1x290xf32, #tpu.memory_space<vmem>>, vector<1x256xf32>,
      %c0_25 = arith.constant 0 : index
      %c0_26 = arith.constant 0 : index
      %25 = vector.load %arg7[%c0_25, %c0_26] : memref<1x256xf32, #tpu.memory_space<vmem>>, vector<1x256xf32>
      %c0_27 = arith.constant 0 : index
      %c17_28 = arith.constant 17 : index
      %26 = vector.load %arg9[%c0_27, %c17_28] : memref<1x290xf32, #tpu.memory_space<vmem>>, vector<1x256xf32>
      tpu.vector_store %arg9[%c0_27, %c17_28], %25 {strides = array<i32>} : memref<1x290xf32, #tpu.memory_space<vmem>>, vector<1x256xf32>,
      %c0_29 = arith.constant 0 : index
      %27 = memref.load %arg2[%c0_29] : memref<18xf32, #tpu.memory_space<smem>>
      %c1 = arith.constant 1 : index
      %28 = memref.load %arg2[%c1] : memref<18xf32, #tpu.memory_space<smem>>
      %c2 = arith.constant 2 : index
      %29 = memref.load %arg2[%c2] : memref<18xf32, #tpu.memory_space<smem>>
      %c3 = arith.constant 3 : index
      %30 = memref.load %arg2[%c3] : memref<18xf32, #tpu.memory_space<smem>>
      %c4 = arith.constant 4 : index
      %31 = memref.load %arg2[%c4] : memref<18xf32, #tpu.memory_space<smem>>
      %c5 = arith.constant 5 : index
      %32 = memref.load %arg2[%c5] : memref<18xf32, #tpu.memory_space<smem>>
      %c6 = arith.constant 6 : index
      %33 = memref.load %arg2[%c6] : memref<18xf32, #tpu.memory_space<smem>>
      %c7 = arith.constant 7 : index
      %34 = memref.load %arg2[%c7] : memref<18xf32, #tpu.memory_space<smem>>
      %c8 = arith.constant 8 : index
      %35 = memref.load %arg2[%c8] : memref<18xf32, #tpu.memory_space<smem>>
      %c9 = arith.constant 9 : index
      %36 = memref.load %arg2[%c9] : memref<18xf32, #tpu.memory_space<smem>>
      %c10 = arith.constant 10 : index
      %37 = memref.load %arg2[%c10] : memref<18xf32, #tpu.memory_space<smem>>
      %c11 = arith.constant 11 : index
      %38 = memref.load %arg2[%c11] : memref<18xf32, #tpu.memory_space<smem>>
      %c12 = arith.constant 12 : index
      %39 = memref.load %arg2[%c12] : memref<18xf32, #tpu.memory_space<smem>>
      %c13 = arith.constant 13 : index
      %40 = memref.load %arg2[%c13] : memref<18xf32, #tpu.memory_space<smem>>
      %c14 = arith.constant 14 : index
      %41 = memref.load %arg2[%c14] : memref<18xf32, #tpu.memory_space<smem>>
      %c15 = arith.constant 15 : index
      %42 = memref.load %arg2[%c15] : memref<18xf32, #tpu.memory_space<smem>>
      %c16 = arith.constant 16 : index
      %43 = memref.load %arg2[%c16] : memref<18xf32, #tpu.memory_space<smem>>
      %c17_30 = arith.constant 17 : index
      %44 = memref.load %arg2[%c17_30] : memref<18xf32, #tpu.memory_space<smem>>
      %c0_31 = arith.constant 0 : index
      %45 = memref.load %arg3[%c0_31] : memref<1xf32, #tpu.memory_space<smem>>
      %46 = tpu.iota {dimensions = array<i32: 1>} : vector<1x256xi32>
      %c16_i32 = arith.constant 16 : i32
      %c0_i32_32 = arith.constant 0 : i32
      %47 = arith.cmpi eq, %c16_i32, %c0_i32_32 : i32
      %c1_i32 = arith.constant 1 : i32
      %48 = arith.select %47, %c1_i32, %c16_i32 : i32
      %49 = vector.broadcast %48 : i32 to vector<1x256xi32>
      %50 = arith.remsi %46, %49 : vector<1x256xi32>
      %c0_i32_33 = arith.constant 0 : i32
      %51 = vector.broadcast %c0_i32_33 : i32 to vector<1x256xi32>
      %52 = arith.cmpi ne, %50, %51 : vector<1x256xi32>
      %c0_i32_34 = arith.constant 0 : i32
      %53 = vector.broadcast %c0_i32_34 : i32 to vector<1x256xi32>
      %54 = arith.cmpi slt, %50, %53 : vector<1x256xi32>
      %c0_i32_35 = arith.constant 0 : i32
      %55 = arith.cmpi slt, %48, %c0_i32_35 : i32
      %56 = vector.broadcast %55 : i1 to vector<1x256xi1>
      %57 = vector.broadcast %56 : vector<1x256xi1> to vector<1x256xi1>
      %58 = arith.xori %54, %57 : vector<1x256xi1>
      %59 = arith.andi %58, %52 : vector<1x256xi1>
      %60 = vector.broadcast %48 : i32 to vector<1x256xi32>
      %61 = arith.addi %50, %60 : vector<1x256xi32>
      %62 = arith.select %59, %61, %50 : vector<1x256xi1>, vector<1x256xi32>
      %cst_36 = arith.constant 0.000000e+00 : f32
      %63 = vector.broadcast %cst_36 : f32 to vector<1x256xf32>
      %c0_37 = arith.constant 0 : index
      %c0_38 = arith.constant 0 : index
      %64 = vector.load %arg8[%c0_37, %c0_38] : memref<1x290xf32, #tpu.memory_space<vmem>>, vector<1x256xf32>
      %c0_39 = arith.constant 0 : index
      %c0_40 = arith.constant 0 : index
      %65 = vector.load %arg9[%c0_39, %c0_40] : memref<1x290xf32, #tpu.memory_space<vmem>>, vector<1x256xf32>
      %66 = vector.broadcast %27 : f32 to vector<1x256xf32>
      %67 = arith.mulf %66, %64 : vector<1x256xf32>
      %68 = vector.broadcast %36 : f32 to vector<1x256xf32>
      %69 = arith.mulf %68, %65 : vector<1x256xf32>
      %70 = arith.addf %67, %69 : vector<1x256xf32>
      %c1_i32_41 = arith.constant 1 : i32
      %71 = vector.broadcast %c1_i32_41 : i32 to vector<1x256xi32>
      %72 = arith.cmpi sge, %62, %71 : vector<1x256xi32>
      %cst_42 = arith.constant 0.000000e+00 : f32
      %73 = vector.broadcast %cst_42 : f32 to vector<1x256xf32>
      %74 = arith.select %72, %70, %73 : vector<1x256xi1>, vector<1x256xf32>
      %75 = arith.addf %63, %74 : vector<1x256xf32>
      %c0_43 = arith.constant 0 : index
      %c1_44 = arith.constant 1 : index
      %76 = vector.load %arg8[%c0_43, %c1_44] : memref<1x290xf32, #tpu.memory_space<vmem>>, vector<1x256xf32>
      %c0_45 = arith.constant 0 : index
      %c1_46 = arith.constant 1 : index
      %77 = vector.load %arg9[%c0_45, %c1_46] : memref<1x290xf32, #tpu.memory_space<vmem>>, vector<1x256xf32>
      %78 = vector.broadcast %28 : f32 to vector<1x256xf32>
      %79 = arith.mulf %78, %76 : vector<1x256xf32>
      %80 = vector.broadcast %37 : f32 to vector<1x256xf32>
      %81 = arith.mulf %80, %77 : vector<1x256xf32>
      %82 = arith.addf %79, %81 : vector<1x256xf32>
      %83 = arith.addf %75, %82 : vector<1x256xf32>
      %c0_47 = arith.constant 0 : index
      %c2_48 = arith.constant 2 : index
      %84 = vector.load %arg8[%c0_47, %c2_48] : memref<1x290xf32, #tpu.memory_space<vmem>>, vector<1x256xf32>
      %c0_49 = arith.constant 0 : index
      %c2_50 = arith.constant 2 : index
      %85 = vector.load %arg9[%c0_49, %c2_50] : memref<1x290xf32, #tpu.memory_space<vmem>>, vector<1x256xf32>
      %86 = vector.broadcast %29 : f32 to vector<1x256xf32>
      %87 = arith.mulf %86, %84 : vector<1x256xf32>
      %88 = vector.broadcast %38 : f32 to vector<1x256xf32>
      %89 = arith.mulf %88, %85 : vector<1x256xf32>
      %90 = arith.addf %87, %89 : vector<1x256xf32>
      %c15_i32 = arith.constant 15 : i32
      %91 = vector.broadcast %c15_i32 : i32 to vector<1x256xi32>
      %92 = arith.cmpi slt, %62, %91 : vector<1x256xi32>
      %cst_51 = arith.constant 0.000000e+00 : f32
      %93 = vector.broadcast %cst_51 : f32 to vector<1x256xf32>
      %94 = arith.select %92, %90, %93 : vector<1x256xi1>, vector<1x256xf32>
      %95 = arith.addf %83, %94 : vector<1x256xf32>
      %c0_52 = arith.constant 0 : index
      %c16_53 = arith.constant 16 : index
      %96 = vector.load %arg8[%c0_52, %c16_53] : memref<1x290xf32, #tpu.memory_space<vmem>>, vector<1x256xf32>
      %c0_54 = arith.constant 0 : index
      %c16_55 = arith.constant 16 : index
      %97 = vector.load %arg9[%c0_54, %c16_55] : memref<1x290xf32, #tpu.memory_space<vmem>>, vector<1x256xf32>
      %98 = vector.broadcast %30 : f32 to vector<1x256xf32>
      %99 = arith.mulf %98, %96 : vector<1x256xf32>
      %100 = vector.broadcast %39 : f32 to vector<1x256xf32>
      %101 = arith.mulf %100, %97 : vector<1x256xf32>
      %102 = arith.addf %99, %101 : vector<1x256xf32>
      %c1_i32_56 = arith.constant 1 : i32
      %103 = vector.broadcast %c1_i32_56 : i32 to vector<1x256xi32>
      %104 = arith.cmpi sge, %62, %103 : vector<1x256xi32>
      %cst_57 = arith.constant 0.000000e+00 : f32
      %105 = vector.broadcast %cst_57 : f32 to vector<1x256xf32>
      %106 = arith.select %104, %102, %105 : vector<1x256xi1>, vector<1x256xf32>
      %107 = arith.addf %95, %106 : vector<1x256xf32>
      %c0_58 = arith.constant 0 : index
      %c17_59 = arith.constant 17 : index
      %108 = vector.load %arg8[%c0_58, %c17_59] : memref<1x290xf32, #tpu.memory_space<vmem>>, vector<1x256xf32>
      %c0_60 = arith.constant 0 : index
      %c17_61 = arith.constant 17 : index
      %109 = vector.load %arg9[%c0_60, %c17_61] : memref<1x290xf32, #tpu.memory_space<vmem>>, vector<1x256xf32>
      %110 = vector.broadcast %31 : f32 to vector<1x256xf32>
      %111 = arith.mulf %110, %108 : vector<1x256xf32>
      %112 = vector.broadcast %40 : f32 to vector<1x256xf32>
      %113 = arith.mulf %112, %109 : vector<1x256xf32>
      %114 = arith.addf %111, %113 : vector<1x256xf32>
      %115 = arith.addf %107, %114 : vector<1x256xf32>
      %c0_62 = arith.constant 0 : index
      %c18 = arith.constant 18 : index
      %116 = vector.load %arg8[%c0_62, %c18] : memref<1x290xf32, #tpu.memory_space<vmem>>, vector<1x256xf32>
      %c0_63 = arith.constant 0 : index
      %c18_64 = arith.constant 18 : index
      %117 = vector.load %arg9[%c0_63, %c18_64] : memref<1x290xf32, #tpu.memory_space<vmem>>, vector<1x256xf32>
      %118 = vector.broadcast %32 : f32 to vector<1x256xf32>
      %119 = arith.mulf %118, %116 : vector<1x256xf32>
      %120 = vector.broadcast %41 : f32 to vector<1x256xf32>
      %121 = arith.mulf %120, %117 : vector<1x256xf32>
      %122 = arith.addf %119, %121 : vector<1x256xf32>
      %c15_i32_65 = arith.constant 15 : i32
      %123 = vector.broadcast %c15_i32_65 : i32 to vector<1x256xi32>
      %124 = arith.cmpi slt, %62, %123 : vector<1x256xi32>
      %cst_66 = arith.constant 0.000000e+00 : f32
      %125 = vector.broadcast %cst_66 : f32 to vector<1x256xf32>
      %126 = arith.select %124, %122, %125 : vector<1x256xi1>, vector<1x256xf32>
      %127 = arith.addf %115, %126 : vector<1x256xf32>
      %c0_67 = arith.constant 0 : index
      %c32 = arith.constant 32 : index
      %128 = vector.load %arg8[%c0_67, %c32] : memref<1x290xf32, #tpu.memory_space<vmem>>, vector<1x256xf32>
      %c0_68 = arith.constant 0 : index
      %c32_69 = arith.constant 32 : index
      %129 = vector.load %arg9[%c0_68, %c32_69] : memref<1x290xf32, #tpu.memory_space<vmem>>, vector<1x256xf32>
      %130 = vector.broadcast %33 : f32 to vector<1x256xf32>
      %131 = arith.mulf %130, %128 : vector<1x256xf32>
      %132 = vector.broadcast %42 : f32 to vector<1x256xf32>
      %133 = arith.mulf %132, %129 : vector<1x256xf32>
      %134 = arith.addf %131, %133 : vector<1x256xf32>
      %c1_i32_70 = arith.constant 1 : i32
      %135 = vector.broadcast %c1_i32_70 : i32 to vector<1x256xi32>
      %136 = arith.cmpi sge, %62, %135 : vector<1x256xi32>
      %cst_71 = arith.constant 0.000000e+00 : f32
      %137 = vector.broadcast %cst_71 : f32 to vector<1x256xf32>
      %138 = arith.select %136, %134, %137 : vector<1x256xi1>, vector<1x256xf32>
      %139 = arith.addf %127, %138 : vector<1x256xf32>
      %c0_72 = arith.constant 0 : index
      %c33 = arith.constant 33 : index
      %140 = vector.load %arg8[%c0_72, %c33] : memref<1x290xf32, #tpu.memory_space<vmem>>, vector<1x256xf32>
      %c0_73 = arith.constant 0 : index
      %c33_74 = arith.constant 33 : index
      %141 = vector.load %arg9[%c0_73, %c33_74] : memref<1x290xf32, #tpu.memory_space<vmem>>, vector<1x256xf32>
      %142 = vector.broadcast %34 : f32 to vector<1x256xf32>
      %143 = arith.mulf %142, %140 : vector<1x256xf32>
      %144 = vector.broadcast %43 : f32 to vector<1x256xf32>
      %145 = arith.mulf %144, %141 : vector<1x256xf32>
      %146 = arith.addf %143, %145 : vector<1x256xf32>
      %147 = arith.addf %139, %146 : vector<1x256xf32>
      %c0_75 = arith.constant 0 : index
      %c34 = arith.constant 34 : index
      %148 = vector.load %arg8[%c0_75, %c34] : memref<1x290xf32, #tpu.memory_space<vmem>>, vector<1x256xf32>
      %c0_76 = arith.constant 0 : index
      %c34_77 = arith.constant 34 : index
      %149 = vector.load %arg9[%c0_76, %c34_77] : memref<1x290xf32, #tpu.memory_space<vmem>>, vector<1x256xf32>
      %150 = vector.broadcast %35 : f32 to vector<1x256xf32>
      %151 = arith.mulf %150, %148 : vector<1x256xf32>
      %152 = vector.broadcast %44 : f32 to vector<1x256xf32>
      %153 = arith.mulf %152, %149 : vector<1x256xf32>
      %154 = arith.addf %151, %153 : vector<1x256xf32>
      %c15_i32_78 = arith.constant 15 : i32
      %155 = vector.broadcast %c15_i32_78 : i32 to vector<1x256xi32>
      %156 = arith.cmpi slt, %62, %155 : vector<1x256xi32>
      %cst_79 = arith.constant 0.000000e+00 : f32
      %157 = vector.broadcast %cst_79 : f32 to vector<1x256xf32>
      %158 = arith.select %156, %154, %157 : vector<1x256xi1>, vector<1x256xf32>
      %159 = arith.addf %147, %158 : vector<1x256xf32>
      %160 = vector.broadcast %45 : f32 to vector<1x256xf32>
      %161 = arith.addf %159, %160 : vector<1x256xf32>
      %162 = arith.negf %161 : vector<1x256xf32>
      %163 = math.exp %162 : vector<1x256xf32>
      %cst_80 = arith.constant 1.000000e+00 : f32
      %164 = vector.broadcast %cst_80 : f32 to vector<1x256xf32>
      %165 = arith.addf %164, %163 : vector<1x256xf32>
      %166 = arith.divf %164, %165 : vector<1x256xf32>
      %c0_81 = arith.constant 0 : index
      %c0_82 = arith.constant 0 : index
      %c0_83 = arith.constant 0 : index
      %167 = vector.load %arg5[%c0_81, %c0_82, %c0_83] : memref<1x1x256xf32, #tpu.memory_space<vmem>>, vector<1x1x256xf32>
      %168 = vector.shape_cast %167 : vector<1x1x256xf32> to vector<1x256xf32>
      %169 = vector.shape_cast %166 : vector<1x256xf32> to vector<1x1x256xf32>
      tpu.vector_store %arg5[%c0_81, %c0_82, %c0_83], %169 {strides = array<i32>} : memref<1x1x256xf32, #tpu.memory_space<vmem>>, vector<1x1x256xf32>,
    } else {
    }
    return
  }
  func.func @transform_0(%arg0: i32, %arg1: i32) -> i32 {
    %c0_i32 = arith.constant 0 : i32
    %c0_i32_0 = arith.constant 0 : i32
    return %c0_i32 : i32
  }
  func.func @transform_1(%arg0: i32, %arg1: i32) -> i32 {
    %c0_i32 = arith.constant 0 : i32
    %c0_i32_0 = arith.constant 0 : i32
    return %c0_i32 : i32
  }
  func.func @transform_2(%arg0: i32, %arg1: i32) -> (i32, i32, i32) {
    %c0_i32 = arith.constant 0 : i32
    %c0_i32_0 = arith.constant 0 : i32
    return %arg0, %arg1, %c0_i32 : i32, i32, i32
  }
  func.func @transform_3(%arg0: i32, %arg1: i32) -> (i32, i32, i32) {
    %c0_i32 = arith.constant 0 : i32
    %c0_i32_0 = arith.constant 0 : i32
    %c0_i32_1 = arith.constant 0 : i32
    return %arg0, %c0_i32, %c0_i32_0 : i32, i32, i32
  }
}

</mosaic_0001>

<bundles_post_ra>
// kernel: tpu_custom_call.1
= control target key start
LH: loop header
LB: loop body
LE: loop exit
PB: predicated region body
PF: predicated region fallthrough
CT: control target
= control target key end

     0   :  { %s1293_s0 = inlined_call_operand.vmem [shape: f32[18], index: 0, kind: input, shape index: {}]   ;;  %s1294_s1 = inlined_call_operand.<no memory space> [shape: f32[1], index: 1, kind: input, shape index: {}]   ;;  %s1295_s2 = inlined_call_operand.hbm [shape: f32[2,4,256], index: 2, kind: input, shape index: {}]   ;;  %s1296_s3 = inlined_call_operand.hbm [shape: f32[2,1,256], index: 3, kind: output, shape index: {}]  }
   0x1   :  { %8 = sst [smem:[#allocation6]] %s1294_s1 }
   0x2   :  { %9 = vsyncpa [#allocation10], 0 }
   0x3   :  { %10 = vsyncpa [#allocation8], 0 }
   0x4   :  { %12 = vsyncpa [#allocation8 + $0x1], 0 }
   0x5   :  { %13 = vsyncpa [#allocation9], 0 }
   0x6   :  { %15 = vsyncpa [#allocation9 + $0x1], 0  ;;  %s1029_s14 = smov 0   ;;  %s1031_s15 = smov 0  }
   0x7   :  { %s1033_s16 = smov 0   ;;  %s1035_s17 = smov 0  }
   0x8   :  { %s1037_s18 = smov 0   ;;  %s1039_s19 = smov 0  }
   0x9 LB: > { %s733_s1 = sadd.s32 4294967295, %s992_s19   ;;  %s734_s20 = sadd.s32 4294967294, %s992_s19   ;;  %s992_s19 = sphi %s1039_s19, %s21_s19   ;;  %s988_s18 = sphi %s1037_s18, %s1320_s18   ;;  %s984_s17 = sphi %s1035_s17, %s1319_s17   ;;  %s980_s16 = sphi %s1033_s16, %s1318_s16   ;;  %s976_s15 = sphi %s1031_s15, %s1317_s15   ;;  %s972_s14 = sphi %s1029_s14, %s1316_s14  }
   0xa   : > { %p97_p0 = scmp.ne.s32.totalorder %s976_s15, %s972_s14  ;;  %p1063_p1 = scmp.eq.s32.totalorder %s733_s1, 0 }
   0xb   : > { %p1067_p2 = scmp.eq.s32.totalorder %s733_s1, 1  ;;  %p127_p3 = scmp.eq.s32.totalorder %s734_s20, 1 }
   0xc   : > { %p1073_p4 = por %p1063_p1, %p97_p0  ;;  %p735_p5 = scmp.ge.s32.totalorder %s992_s19, 1 }
   0xd   : > { %p1078_p6 = por %p127_p3, %p97_p0  ;;  %p134_p7 = scmp.lt.s32.totalorder %s992_s19, 3 }
   0xe   : > { %s146_s27 = sshll.u32 %s1293_s0, 4  ;;  %s33_s29 = sadd.s32 1, %s988_s18  ;;  %s147_s27 = int_to_ptr.vmem [resolvable:$true] %s146_s27 }
   0xf   : > { %p1086_p8 = pnand %p735_p5, %p134_p7  ;;  %s84_s30 = sadd.s32 1, %s980_s16 }
  0x10   : > { %p35_p12 = scmp.ge.s32.totalorder %s33_s29, 2  ;;  %s994_s4 = smov [#allocation7]  }
  0x11   : > { %p777_p10 = pneg %p1086_p8  ;;  %p91_p13 = scmp.ne.s32.totalorder %s980_s16, %s976_s15 }
  0x12   : > { %s1322_s29 = smov (%p35_p12, %s33_s29), 0  ;;  %p92_p0 = scmp.eq.s32.totalorder %s992_s19, 0 }
  0x13   : > { %p778_p11 = pnand %p777_p10, %p1063_p1  ;;  %s79_s5 = ssub.s32 %s988_s18, %s1322_s29 }
  0x14   : > { %p790_p3 = scmp.lt.s32.totalorder %s992_s19, 2  ;;  %p82_p5 = scmp.eq.s32.totalorder %s79_s5, 0 }
  0x15   : > { %780 = dma.vmem_to_smem (!%p778_p11), %s147_s27, 16, %s994_s4, [#allocation10]  }
  0x16   : > { %p93_p7 = por %p92_p0, %p91_p13  ;;  %p1107_p9 = por %p1067_p2, %p91_p13 }
  0x17   : > { %s160_s7 = sand.u32 1, %s980_s16   ;;  %s768_s10 = sshll.u32 %s988_s18, 3 }
  0x18   : > { %s1113_s8 = scalar_select %p82_p5, %s980_s16, %s84_s30  }
  0x19   : > { %s738_s9 = sshll.u32 %s160_s7, 3  ;;  %s171_s13 = scalar_lea.hbm %s1295_s2, %s768_s10 }
  0x1a   : > { %s164_s1 = scalar_lea.vmem [#allocation11], %s738_s9  ;;  %s173_s25 = sshll.u32 %s171_s13, 4  ;;  %s174_s25 = int_to_ptr.hbm [resolvable:$true] %s173_s25 }
  0x1b   : > { %s175_s20 = sshll.u32 %s164_s1, 4  ;;  %p782_p10 = pnand %p790_p3, %p93_p7  ;;  %s176_s20 = int_to_ptr.vmem [resolvable:$true] %s175_s20 }
  0x1c   : > { %s161_s22 = scalar_lea.sflag [#allocation8], %s160_s7  ;;  %184 = sbr.rel (%p1086_p8) target bundleno = 432 (0x1b0), region = 32 }
  0x1d   : > { %784 = dma.hbm_to_vmem [thread:$0]  (!%p782_p10), %s174_s25, 128, %s176_s20, %s161_s22  }
  0x21   : > { %959 = dma.done.wait (%p1063_p1), [#allocation10], 16  }
  0x22   : > { %961 = vsyncadd (%p1063_p1), [#allocation10], 4294967280  ;;  %s1128_s26 = sand.u32 1, %s976_s15  }
  0x23   : > { %s743_s27 = sshll.u32 %s1128_s26, 3  ;;  %s192_s30 = scalar_lea.sflag [#allocation8], %s1128_s26 }
  0x24   : > { %s195_s4 = scalar_lea.vmem [#allocation11], %s743_s27 }
  0x25   : > { %963 = dma.done.wait (%p1073_p4), %s192_s30, 128  }
  0x26   : > { %965 = vsyncadd (%p1073_p4), %s192_s30, 4294967168 }
  0x27   : > { %201 = sfence }
  0x28   : > { %v224_v0 = vlaneseq  ;;  %v230_v1 = vld [vmem:[%s195_s4] sm:$0xff]  ;;  %v995_v3 = vmov -inf   ;;  %v996_v4 = vmov 0.0   ;;  %vm238_vm1 = vcmask 1043456   ;;  %s997_s21 = smov 17   ;;  %s746_s23 = sld [smem:[#allocation7 + $0x2]] }
  0x29   : > { %233 = vst [vmem:[#allocation1] ss:$2 sm:$0xff] %v230_v1  ;;  %vm256_vm6 = vcmask 1040384   ;;  %vm309_vm8 = vcmask 138240   ;;  %s745_s28 = sld [smem:[#allocation7 + $0x1]]  ;;  %s998_s13 = smov 126  }
  0x2a   : > { %vm1137_vm0 = vcmp.lt.s32.totalorder %v224_v0, 256  ;;  %vm295_vm2 = vcmp.lt.s32.totalorder %v224_v0, 17  ;;  %vm1149_vm3 = vcmp.ge.s32.totalorder %v224_v0, 17  ;;  %vm299_vm4 = vcmp.lt.s32.totalorder %v224_v0, 34  ;;  %s755_s5 = sld [smem:[#allocation7 + $0xb]]  ;;  %s999_s1 = smov 127  }
  0x2b   : > { %228 = vst.msk [vmem:[#allocation2] sm:$0x3] %vm1137_vm0, %v995_v3  ;;  %vm300_vm5 = vmand %vm1149_vm3, %vm299_vm4  ;;  %vm312_vm7 = vcmp.lt.s32.totalorder %v224_v0, 273  ;;  %s754_s7 = sld [smem:[#allocation7 + $0xa]]  ;;  %s1000_s20 = smov 112   ;;  %vm404_vm10 = vcmask 1039360  }
  0x2c   : > { %229 = vst.msk [vmem:[#allocation3] sm:$0x3] %vm1137_vm0, %v996_v4  ;;  %vm313_vm9 = vmand %vm1149_vm3, %vm312_vm7  ;;  %s756_s9 = sld [smem:[#allocation7 + $0xc]]  ;;  %s1001_s4 = smov 111   ;;  %vm428_vm12 = vcmask 1031168   ;;  %vm452_vm14 = vcmask 916480  }
  0x2d   : > { %297 = vst.msk [vmem:[#allocation4] sm:$0x1] %vm295_vm2, %v996_v4  ;;  %s747_s10 = sld [smem:[#allocation7 + $0x3]]  ;;  %vm498_vm15 = vcmask 900096   ;;  %vm522_vm4 = vcmask 785408   ;;  %vm568_vm7 = vcmask 769024  }
  0x2e   : > { %301 = vst.msk [vmem:[#allocation4 + $0x2] sm:$0x1] %vm300_vm5, %v996_v4  ;;  %v411_v55 = vstv %s746_s23  ;;  %s757_s11 = sld [smem:[#allocation7 + $0xd]] }
  0x2f   : > { %302 = vst.msk [vmem:[#allocation5] sm:$0x1] %vm295_vm2, %v996_v4  ;;  %v389_v57 = vstv %s745_s28  ;;  %s748_s12 = sld [smem:[#allocation7 + $0x4]]  ;;  %s1002_s28 = smov 110  }
  0x30   : > { %v234_v5 = vld.sshfl [vmem:[#allocation1] sm:$0xff pattern:$0x75316420]  ;;  %v235_v6 = vld.sshfl [vmem:[#allocation1 + $0x8] sm:$0xff pattern:$0x75316420]  ;;  %v413_v56 = vstv %s755_s5 }
  0x31   : > { %v239_v7 = vsel %vm238_vm1, %v234_v5, -inf  ;;  %v246_v8 = vsel %vm238_vm1, %v235_v6, -inf  ;;  %266 = vst [vmem:[#allocation1] ss:$2 sm:$0xff] %v230_v1  ;;  %v391_v58 = vstv %s754_s7  ;;  %s758_s25 = sld [smem:[#allocation7 + $0xe]]  ;;  %s1003_s5 = smov 96  }
  0x32   : > { %v240_v9 = vrot.slane %v239_v7, 4  ;;  %v247_v10 = vrot.slane %v246_v8, 4  ;;  %303 = vst.msk [vmem:[#allocation5 + $0x2] sm:$0x1] %vm300_vm5, %v996_v4  ;;  %v231_v30 = vld [vmem:[#allocation2] sm:$0x3]  ;;  %v439_v4 = vstv %s756_s9 }
  0x33   : > { %v265_v42 = vld [vmem:[#allocation3] sm:$0x3]  ;;  %s759_s22 = sld [smem:[#allocation7 + $0xf]]  ;;  %vm546_vm5 = vcmask 777216  }
  0x34   : > { %v241_v12 = vmax.f32 %v239_v7, %v240_v9  ;;  %v248_v13 = vmax.f32 %v246_v8, %v247_v10  ;;  %v437_v8 = vstv %s747_s10  ;;  %s749_s27 = sld [smem:[#allocation7 + $0x5]]  ;;  %s1004_s10 = smov 95  }
  0x35   : > { %s750_s30 = sld [smem:[#allocation7 + $0x6]] }
  0x36   : > { %v242_v14 = vrot.slane %v241_v12, 2  ;;  %v249_v15 = vrot.slane %v248_v13, 2  ;;  %s751_s23 = sld [smem:[#allocation7 + $0x7]] }
  0x37   : > { %s761_s7 = sld [smem:[#allocation7 + $0x11]] }
  0x38   : > { %v243_v16 = vmax.f32 %v241_v12, %v242_v14  ;;  %v250_v17 = vmax.f32 %v248_v13, %v249_v15  ;;  %v267_v18 = vld.sshfl [vmem:[#allocation1] sm:$0xff pattern:$0x75316420]  ;;  %v268_v19 = vld.sshfl [vmem:[#allocation1 + $0x8] sm:$0xff pattern:$0x75316420]  ;;  %v463_v12 = vstv %s757_s11  ;;  %v461_v15 = vstv %s748_s12 }
  0x39   : > { %v271_v20 = vsel %vm238_vm1, %v267_v18, 0.0  ;;  %v278_v21 = vsel %vm238_vm1, %v268_v19, 0.0  ;;  %s752_s9 = sld [smem:[#allocation7 + $0x8]]  ;;  %s1005_s11 = smov 94   ;;  %vm476_vm1 = vcmask 908288  }
  0x3a   : > { %v244_v22 = vrot.slane %v243_v16, 1  ;;  %v251_v23 = vrot.slane %v250_v17, 1  ;;  %v272_v24 = vrot.slane %v271_v20, 4  ;;  %v279_v25 = vrot.slane %v278_v21, 4  ;;  %s753_s12 = sld [smem:[#allocation7 + $0x9]] }
  0x3c   : > { %v245_v26 = vmax.f32 %v243_v16, %v244_v22  ;;  %v252_v27 = vmax.f32 %v250_v17, %v251_v23  ;;  %v273_v28 = vadd.f32 %v272_v24, %v271_v20  ;;  %v280_v29 = vadd.f32 %v279_v25, %v278_v21 }
  0x3d   : > { %v485_v23 = vstv %s758_s25  ;;  %v509_v24 = vstv %s759_s22  ;;  %v483_v25 = vstv %s749_s27  ;;  %s765_s25 = sshll.u32 %s984_s17, 1 }
  0x3e   : > { %v255_v31 = vrot.slane %v252_v27, 7  ;;  %v274_v32 = vrot.slane %v273_v28, 2  ;;  %v281_v33 = vrot.slane %v280_v29, 2 }
  0x40   : > { %v257_v34 = vsel %vm256_vm6, %v245_v26, %v255_v31  ;;  %v275_v35 = vadd.f32 %v274_v32, %v273_v28  ;;  %v282_v36 = vadd.f32 %v281_v33, %v280_v29  ;;  %v507_v29 = vstv %s750_s30  ;;  %s635_s30 = scalar_lea.hbm %s1296_s3, %s765_s25 }
  0x41   : > { %v259_v37 = vmax.f32 %v231_v30, %v257_v34  ;;  %s639_s17 = sshll.u32 %s635_s30, 4  ;;  %s640_s17 = int_to_ptr.hbm [resolvable:$true] %s639_s17 }
  0x42   : > { %v276_v38 = vrot.slane %v275_v35, 1  ;;  %v283_v39 = vrot.slane %v282_v36, 1 }
  0x43   : > { %264 = vst.msk [vmem:[#allocation2] sm:$0x3] %vm1137_vm0, %v259_v37 }
  0x44   : > { %v277_v40 = vadd.f32 %v276_v38, %v275_v35  ;;  %v284_v41 = vadd.f32 %v283_v39, %v282_v36  ;;  %v531_v39 = vstv %s751_s23  ;;  %s625_s23 = scalar_lea.sflag [#allocation9], %s1128_s26 }
  0x46   : > { %v287_v43 = vrot.slane %v284_v41, 7 }
  0x48   : > { %v288_v44 = vsel %vm256_vm6, %v277_v40, %v287_v43 }
  0x49   : > { %v290_v45 = vadd.f32 %v288_v44, %v265_v42 }
  0x4a   : > { %v304_v46 = vld [vmem:[#allocation2] sm:$0x3] }
  0x4b   : > { %306 = vrot.lane.b32.xlu0 %v304_v46, %s997_s21  ;;  %291 = vst.msk [vmem:[#allocation3] sm:$0x3] %vm1137_vm0, %v290_v45 }
  0x52   : > { %v315_v47 = vld [vmem:[#allocation3] sm:$0x3] }
  0x53   : > { %317 = vrot.lane.b32.xlu0 %v315_v47, %s997_s21  ;;  %s760_s21 = sld [smem:[#allocation7 + $0x10]]  ;;  %v555_v47 = vstv %s761_s7 }
  0x59   : > { %v533_v36 = vstv %s760_s21 }
  0xbd   : > { %v307_v48 = vpop.permute.xlu0 %306 }
  0xbe   : > { %v308_v49 = vrot.slane %v307_v48, 7 }
  0xc0   : > { %v310_v50 = vsel %vm309_vm8, %v308_v49, %v307_v48  ;;  %v553_v48 = vstv %s752_s9 }
  0xc1   : > { %314 = vst.msk [vmem:[#allocation4] sm:$0x7] %vm313_vm9, %v310_v50 }
  0xc5   : > { %v318_v51 = vpop.permute.xlu0 %317 }
  0xc6   : > { %v319_v52 = vrot.slane %v318_v51, 7 }
  0xc8   : > { %v320_v53 = vsel %vm309_vm8, %v319_v52, %v318_v51  ;;  %v1167_v54 = vld [vmem:[#allocation4] sm:$0x7] }
  0xc9   : > { %322 = vst.msk [vmem:[#allocation5] sm:$0x7] %vm313_vm9, %v320_v53  ;;  %v412_v60 = vmul.f32 %v411_v55, %v1167_v54  ;;  %v390_v62 = vmul.f32 %v389_v57, %v1167_v54  ;;  %v438_v10 = vmul.f32 %v437_v8, %v1167_v54  ;;  %v462_v18 = vmul.f32 %v461_v15, %v1167_v54 }
  0xca   : > { %v484_v32 = vmul.f32 %v483_v25, %v1167_v54  ;;  %v508_v33 = vmul.f32 %v507_v29, %v1167_v54  ;;  %v532_v42 = vmul.f32 %v531_v39, %v1167_v54  ;;  %v554_v53 = vmul.f32 %v553_v48, %v1167_v54 }
  0xd0   : > { %v1169_v59 = vld [vmem:[#allocation5] sm:$0x7] }
  0xd1   : > { %v414_v61 = vmul.f32 %v413_v56, %v1169_v59  ;;  %v392_v63 = vmul.f32 %v391_v58, %v1169_v59  ;;  %v440_v9 = vmul.f32 %v439_v4, %v1169_v59  ;;  %v464_v17 = vmul.f32 %v463_v12, %v1169_v59  ;;  %v370_v8 = vld [vmem:[#allocation5] sm:$0x3] }
  0xd2   : > { %v486_v28 = vmul.f32 %v485_v23, %v1169_v59  ;;  %v510_v31 = vmul.f32 %v509_v24, %v1169_v59  ;;  %v534_v41 = vmul.f32 %v533_v36, %v1169_v59  ;;  %v556_v51 = vmul.f32 %v555_v47, %v1169_v59 }
  0xd3   : > { %v415_v1 = vadd.f32 %v414_v61, %v412_v60  ;;  %v393_v3 = vadd.f32 %v392_v63, %v390_v62  ;;  %v441_v11 = vadd.f32 %v440_v9, %v438_v10  ;;  %v465_v19 = vadd.f32 %v464_v17, %v462_v18  ;;  %v369_v10 = vld [vmem:[#allocation4] sm:$0x3] }
  0xd4   : > { %v487_v34 = vadd.f32 %v486_v28, %v484_v32  ;;  %v511_v35 = vadd.f32 %v510_v31, %v508_v33  ;;  %v535_v43 = vadd.f32 %v534_v41, %v532_v42  ;;  %v557_v55 = vadd.f32 %v556_v51, %v554_v53 }
  0xd5   : > { %v420_v5 = vperm.slane %v415_v1, 1  ;;  %v396_v6 = vperm.slane %v393_v3, 1  ;;  %v395_v7 = vperm.slane %v393_v3, 0  ;;  %v421_v13 = vperm.slane %v415_v1, 2 }
  0xd6   : > { %v397_v14 = vperm.slane %v393_v3, 2  ;;  %v445_v16 = vperm.slane %v441_v11, 2  ;;  %v444_v20 = vperm.slane %v441_v11, 1  ;;  %v419_v21 = vperm.slane %v415_v1, 0 }
  0xd7   : > { %424 = vrot.lane.b32.xlu2 %v420_v5, %s998_s13  ;;  %400 = vrot.lane.b32.xlu1 %v396_v6, %s999_s1  ;;  %v469_v22 = vperm.slane %v465_v19, 2  ;;  %v468_v26 = vperm.slane %v465_v19, 1  ;;  %v443_v27 = vperm.slane %v441_v11, 0  ;;  %v467_v30 = vperm.slane %v465_v19, 0 }
  0xd8   : > { %398 = vrot.lane.b32.xlu0 %v395_v7, %s999_s1  ;;  %v491_v37 = vperm.slane %v487_v34, 2  ;;  %v490_v38 = vperm.slane %v487_v34, 1  ;;  %v515_v40 = vperm.slane %v511_v35, 2  ;;  %v514_v44 = vperm.slane %v511_v35, 1 }
  0xd9   : > { %v489_v45 = vperm.slane %v487_v34, 0  ;;  %v539_v46 = vperm.slane %v535_v43, 2  ;;  %v538_v49 = vperm.slane %v535_v43, 1  ;;  %v513_v50 = vperm.slane %v511_v35, 0 }
  0xda   : > { %v537_v52 = vperm.slane %v535_v43, 0  ;;  %v561_v56 = vperm.slane %v557_v55, 2  ;;  %v560_v57 = vperm.slane %v557_v55, 1  ;;  %v559_v58 = vperm.slane %v557_v55, 0 }
  0xdb   : > { %v343_v6 = vand.u32 127, %v224_v0  ;;  %v373_v7 = vstv %s753_s12 }
  0xdc   : > { %v374_v12 = vmul.f32 %v373_v7, %v370_v8 }
  0xdd   : > { %v349_v28 = vand.u32 15, %v343_v6 }
  0xdf   : > { %426 = vrot.lane.b32.xlu2 %v421_v13, %s998_s13  ;;  %402 = vrot.lane.b32.xlu1 %v397_v14, %s999_s1  ;;  %v344_v14 = vadd.s32 128, %v343_v6  ;;  %vm1205_vm2 = vcmp.ge.s32.totalorder %v349_v28, 1  ;;  %vm1209_vm3 = vcmp.lt.s32.totalorder %v349_v28, 15  ;;  %s1229_s1 = sld [smem:[#allocation6]] }
  0xe0   : > { %450 = vrot.lane.b32.xlu0 %v445_v16, %s1000_s20 }
  0xe1   : > { %v356_v17 = vand.u32 15, %v344_v14 }
  0xe3   : > { %vm1190_vm11 = vcmp.ge.s32.totalorder %v356_v17, 1  ;;  %vm1197_vm13 = vcmp.lt.s32.totalorder %v356_v17, 15 }
  0xe5   : > { %v577_v8 = vstv %s1229_s1 }
  0xe7   : > { %448 = vrot.lane.b32.xlu2 %v444_v20, %s1000_s20  ;;  %422 = vrot.lane.b32.xlu1 %v419_v21, %s998_s13  ;;  %s323_s13 = sld [smem:[#allocation7]] }
  0xe8   : > { %474 = vrot.lane.b32.xlu0 %v469_v22, %s1001_s4 }
  0xed   : > { %v371_v11 = vstv %s323_s13 }
  0xee   : > { %v372_v15 = vmul.f32 %v371_v11, %v369_v10 }
  0xef   : > { %472 = vrot.lane.b32.xlu2 %v468_v26, %s1001_s4  ;;  %446 = vrot.lane.b32.xlu1 %v443_v27, %s1000_s20  ;;  %s744_s20 = sshll.u32 %s1128_s26, 1 }
  0xf0   : > { %470 = vrot.lane.b32.xlu0 %v467_v30, %s1001_s4  ;;  %v375_v16 = vadd.f32 %v374_v12, %v372_v15  ;;  %s219_s4 = scalar_lea.vmem [#allocation12], %s744_s20 }
  0xf1   : > { %s637_s21 = sshll.u32 %s219_s4, 4  ;;  %s638_s21 = int_to_ptr.vmem [resolvable:$true] %s637_s21 }
  0xf2   : > { %v380_v20 = vperm.slane %v375_v16, 1  ;;  %v379_v33 = vperm.slane %v375_v16, 0 }
  0xf4   : > { %v384_v23 = vsel %vm1190_vm11, %v380_v20, 0.0 }
  0xf7   : > { %496 = vrot.lane.b32.xlu2 %v491_v37, %s1002_s28  ;;  %494 = vrot.lane.b32.xlu1 %v490_v38, %s1002_s28 }
  0xf8   : > { %520 = vrot.lane.b32.xlu0 %v515_v40, %s1003_s5 }
  0xff   : > { %518 = vrot.lane.b32.xlu2 %v514_v44, %s1003_s5  ;;  %492 = vrot.lane.b32.xlu1 %v489_v45, %s1002_s28  ;;  %v383_v44 = vsel %vm1205_vm2, %v379_v33, 0.0  ;;  %s920_s28 = sshra.s32 %s640_s17, 4  ;;  %s921_s28 = int_to_ptr.hbm [resolvable:$true] %s920_s28 }
 0x100   : > { %544 = vrot.lane.b32.xlu0 %v539_v46, %s1004_s10  ;;  %p927_p8 = scmp.lt.s32.totalorder %s921_s28, %s1296_s3 }
 0x107   : > { %542 = vrot.lane.b32.xlu2 %v538_v49, %s1004_s10  ;;  %516 = vrot.lane.b32.xlu1 %v513_v50, %s1003_s5  ;;  %s922_s5 = scalar_lea.hbm %s921_s28, 2 }
 0x108   : > { %540 = vrot.lane.b32.xlu0 %v537_v52, %s1004_s10  ;;  %p923_p1 = scmp.ne.s32.totalorder %s921_s28, %s922_s5  ;;  %s926_s10 = scalar_lea.hbm %s1296_s3, 4 }
 0x109   : > { %p928_p11 = scmp.lt.s32.totalorder %s926_s10, %s922_s5 }
 0x10a   : > { %p924_p2 = pnand %p923_p1, %p1107_p9 }
 0x10b   : > { %p929_p12 = por %p928_p11, %p927_p8 }
 0x10c   : > { %p925_p4 = pneg %p924_p2 }
 0x10e   : > { %p930_p13 = pnand %p929_p12, %p925_p4 }
 0x10f   : > { %566 = vrot.lane.b32.xlu2 %v561_v56, %s1005_s11  ;;  %564 = vrot.lane.b32.xlu1 %v560_v57, %s1005_s11 }
 0x117   : > { %562 = vrot.lane.b32.xlu1 %v559_v58, %s1005_s11 }
 0x131   : > { %v425_v60 = vpop.permute.xlu2 %424 }
 0x139   : > { %v427_v61 = vpop.permute.xlu2 %426 }
 0x13a   : > { %v430_v25 = vsel %vm428_vm12, %v425_v60, %v427_v61 }
 0x13b   : > { %v434_v30 = vsel %vm1197_vm13, %v430_v25, 0.0 }
 0x141   : > { %v449_v1 = vpop.permute.xlu2 %448 }
 0x149   : > { %v401_v62 = vpop.permute.xlu1 %400  ;;  %v1187_v4 = vpop.permute.xlu2 %472 }
 0x14a   : > { %v399_v63 = vpop.permute.xlu0 %398 }
 0x14b   : > { %v405_v38 = vsel %vm404_vm10, %v399_v63, %v401_v62 }
 0x14c   : > { %v409_v48 = vadd.f32 %v405_v38, %v383_v44 }
 0x151   : > { %v403_v59 = vpop.permute.xlu1 %402  ;;  %v497_v13 = vpop.permute.xlu2 %496 }
 0x152   : > { %v451_v3 = vpop.permute.xlu0 %450  ;;  %v406_v0 = vsel %vm404_vm10, %v401_v62, %v403_v59 }
 0x153   : > { %v410_v26 = vadd.f32 %v406_v0, %v384_v23  ;;  %v454_v32 = vsel %vm452_vm14, %v449_v1, %v451_v3 }
 0x154   : > { %v458_v39 = vsel %vm1190_vm11, %v454_v32, 0.0 }
 0x155   : > { %v436_v31 = vadd.f32 %v434_v30, %v410_v26 }
 0x157   : > { %v460_v42 = vadd.f32 %v458_v39, %v436_v31 }
 0x159   : > { %v423_v54 = vpop.permute.xlu1 %422  ;;  %v519_v22 = vpop.permute.xlu2 %518 }
 0x15a   : > { %v475_v5 = vpop.permute.xlu0 %474  ;;  %v429_v36 = vsel %vm428_vm12, %v423_v54, %v425_v60 }
 0x15b   : > { %v478_v40 = vsel %vm476_vm1, %v1187_v4, %v475_v5  ;;  %v433_v45 = vsel %vm1209_vm3, %v429_v36, 0.0 }
 0x15c   : > { %v482_v49 = vadd.f32 %v478_v40, %v460_v42  ;;  %v435_v51 = vadd.f32 %v433_v45, %v409_v48 }
 0x161   : > { %v447_v9 = vpop.permute.xlu1 %446  ;;  %v543_v41 = vpop.permute.xlu2 %542 }
 0x162   : > { %v471_v18 = vpop.permute.xlu0 %470  ;;  %v453_v43 = vsel %vm452_vm14, %v447_v9, %v449_v1 }
 0x163   : > { %v457_v50 = vsel %vm1205_vm2, %v453_v43, 0.0  ;;  %v477_v63 = vsel %vm476_vm1, %v471_v18, %v1187_v4 }
 0x164   : > { %v459_v56 = vadd.f32 %v457_v50, %v435_v51 }
 0x166   : > { %v481_v54 = vadd.f32 %v477_v63, %v459_v56 }
 0x169   : > { %v495_v19 = vpop.permute.xlu1 %494  ;;  %v567_v1 = vpop.permute.xlu2 %566 }
 0x16a   : > { %v521_v29 = vpop.permute.xlu0 %520  ;;  %v500_v37 = vsel %vm498_vm15, %v495_v19, %v497_v13 }
 0x16b   : > { %v504_v46 = vsel %vm1197_vm13, %v500_v37, 0.0  ;;  %v524_v53 = vsel %vm522_vm4, %v519_v22, %v521_v29 }
 0x16c   : > { %v506_v52 = vadd.f32 %v504_v46, %v482_v49  ;;  %v528_v58 = vsel %vm1190_vm11, %v524_v53, 0.0 }
 0x16e   : > { %v530_v61 = vadd.f32 %v528_v58, %v506_v52 }
 0x171   : > { %v493_v27 = vpop.permute.xlu1 %492 }
 0x172   : > { %v545_v55 = vpop.permute.xlu0 %544  ;;  %v499_v57 = vsel %vm498_vm15, %v493_v27, %v495_v19 }
 0x173   : > { %v548_v60 = vsel %vm546_vm5, %v543_v41, %v545_v55  ;;  %v503_v59 = vsel %vm1209_vm3, %v499_v57, 0.0 }
 0x174   : > { %v552_v5 = vadd.f32 %v548_v60, %v530_v61  ;;  %v505_v10 = vadd.f32 %v503_v59, %v481_v54 }
 0x179   : > { %v517_v47 = vpop.permute.xlu1 %516 }
 0x17a   : > { %v523_v62 = vsel %vm522_vm4, %v517_v47, %v519_v22  ;;  %v541_v4 = vpop.permute.xlu0 %540 }
 0x17b   : > { %v527_v7 = vsel %vm1205_vm2, %v523_v62, 0.0  ;;  %v547_v15 = vsel %vm546_vm5, %v541_v4, %v543_v41 }
 0x17c   : > { %v529_v12 = vadd.f32 %v527_v7, %v505_v10 }
 0x17e   : > { %v551_v17 = vadd.f32 %v547_v15, %v529_v12 }
 0x181   : > { %v565_v3 = vpop.permute.xlu1 %564 }
 0x182   : > { %v570_v6 = vsel %vm568_vm7, %v565_v3, %v567_v1 }
 0x183   : > { %v574_v9 = vsel %vm1197_vm13, %v570_v6, 0.0 }
 0x184   : > { %v576_v11 = vadd.f32 %v574_v9, %v552_v5 }
 0x186   : > { %v579_v13 = vadd.f32 %v577_v8, %v576_v11 }
 0x188   : > { %v763_v14 = vmul.f32 -1.442695, %v579_v13 }
 0x189   : > { %v563_v16 = vpop.permute.xlu1 %562 }
 0x18a   : > { %853 = vpow2.f32 %v763_v14  ;;  %v569_v18 = vsel %vm568_vm7, %v563_v16, %v565_v3 }
 0x18b   : > { %v573_v19 = vsel %vm1209_vm3, %v569_v18, 0.0 }
 0x18c   : > { %v575_v20 = vadd.f32 %v573_v19, %v551_v17 }
 0x18e   : > { %v578_v21 = vadd.f32 %v577_v8, %v575_v20 }
 0x190   : > { %v854_v0 = vpop.eup %853  ;;  %v762_v22 = vmul.f32 -1.442695, %v578_v21 }
 0x191   : > { %v587_v23 = vadd.f32 1.0, %v854_v0 }
 0x192   : > { %855 = vpow2.f32 %v762_v22 }
 0x193   : > { %857 = vrcp.f32 %v587_v23  ;;  %v614_v32 = vand.u32 2147483648, %v587_v23  ;;  %vm608_vm9 = vweird.f32 %v587_v23  ;;  %v612_v34 = vand.u32 2147483647, %v587_v23 }
 0x195   : > { %v615_v38 = vor.u32 1.1754944e-38, %v614_v32  ;;  %vm613_vm12 = vcmp.eq.f32.partialorder %v612_v34, 8.507059e+37 }
 0x198   : > { %v856_v24 = vpop.eup %855 }
 0x199   : > { %v858_v25 = vpop.eup %857  ;;  %v586_v26 = vadd.f32 1.0, %v856_v24 }
 0x19a   : > { %v604_v27 = vmul.f32 %v858_v25, %v587_v23  ;;  %vm609_vm8 = vweird.f32 %v858_v25 }
 0x19b   : > { %859 = vrcp.f32 %v586_v26  ;;  %vm610_vm10 = vmor %vm608_vm9, %vm609_vm8  ;;  %v599_v37 = vand.u32 2147483648, %v586_v26  ;;  %v597_v40 = vand.u32 2147483647, %v586_v26  ;;  %vm593_vm13 = vweird.f32 %v586_v26 }
 0x19c   : > { %v605_v28 = vsub.f32 1.0, %v604_v27 }
 0x19d   : > { %v600_v43 = vor.u32 1.1754944e-38, %v599_v37  ;;  %vm598_vm15 = vcmp.eq.f32.partialorder %v597_v40, 8.507059e+37 }
 0x19e   : > { %v606_v29 = vmul.f32 %v858_v25, %v605_v28 }
 0x1a0   : > { %v607_v30 = vadd.f32 %v858_v25, %v606_v29 }
 0x1a1   : > { %v860_v31 = vpop.eup %859 }
 0x1a2   : > { %v589_v33 = vmul.f32 %v860_v31, %v586_v26  ;;  %v611_v36 = vsel %vm610_vm10, %v858_v25, %v607_v30  ;;  %vm594_vm11 = vweird.f32 %v860_v31 }
 0x1a3   : > { %v616_v41 = vsel %vm613_vm12, %v615_v38, %v611_v36  ;;  %vm595_vm14 = vmor %vm593_vm13, %vm594_vm11 }
 0x1a4   : > { %v590_v35 = vsub.f32 1.0, %v589_v33  ;;  %v620_v45 = vrot.slane %v616_v41, 7 }
 0x1a6   : > { %v591_v39 = vmul.f32 %v860_v31, %v590_v35 }
 0x1a8   : > { %v592_v42 = vadd.f32 %v860_v31, %v591_v39 }
 0x1aa   : > { %v596_v44 = vsel %vm595_vm14, %v860_v31, %v592_v42 }
 0x1ab   : > { %v601_v46 = vsel %vm598_vm15, %v600_v43, %v596_v44 }
 0x1ac   : > { %v621_v47 = vsel %vm256_vm6, %v601_v46, %v620_v45 }
 0x1ad   : > { %623 = vst.msk [vmem:[%s219_s4] sm:$0x3] %vm1137_vm0, %v621_v47 }
 0x1ae   : > { %933 = shalt.err (!%p930_p13)
}
 0x1af   : > { %775 = dma.vmem_to_hbm [thread:$0]  (%p1107_p9), %s638_s21, 32, %s640_s17, %s625_s23  }
 0x1b0 PF: > { %s651_s26 = sand.u32 1, %s972_s14   ;;  %p1315_p0 = scmp.ge.s32.totalorder %s992_s19, 2 }
 0x1b1   : > { %s652_s13 = scalar_lea.sflag [#allocation9], %s651_s26 }
 0x1b2   : > { %p786_p3 = pnand %p1315_p0, %p1078_p6 }
 0x1b4   : > { %p787_p5 = pneg %p786_p3 }
 0x1b6   : > { %967 = dma.done.wait (%p787_p5), %s652_s13, 32  }
 0x1b7   : > { %969 = vsyncadd (%p787_p5), %s652_s13, 4294967264  ;;  %s21_s19 = sadd.s32 1, %s992_s19   ;;  %s1316_s14 = smov %s976_s15 }
 0x1b8   : > { %p18_p7 = scmp.ge.s32.totalorder %s21_s19, 4   ;;  %s1317_s15 = smov %s980_s16 }
 0x1b9   : > { %s1318_s16 = smov %s1113_s8  ;;  %s1319_s17 = smov %s988_s18 }
 0x1ba   : > { %s1320_s18 = smov %s1322_s29  ;;  %20 = sbr.rel (!%p18_p7) target bundleno = 9 (0x9), region = 90 }
 0x1bf   :  { %658 = vsyncpa [#allocation8], 1 }
 0x1c0   :  { %660 = vsyncpa [#allocation8 + $0x1], 1 }
 0x1c1   :  { %661 = vsyncpa [#allocation9], 1 }
 0x1c2   :  { %663 = vsyncpa [#allocation9 + $0x1], 1 }
 0x1c3   :  { %664 = vsyncpa [#allocation10], 1 }
 0x1c4   :  { %666 = vsyncpa [#allocation10 + $0x1], 1 }

</bundles_post_ra>
